<compile_context>
chip_gen: v6e
topology: v6e:2x2x1
jax: 0.10.0
libtpu: 0.0.40
codegen_flags: <defaults>
</compile_context>

<pallas_src>
import jax
import jax.numpy as jnp
import numpy as np
from jax.experimental import pallas as pl
from jax.experimental.pallas import tpu as pltpu


def quantum_coherence_kernel(cf_ref, xr_ref, xi_ref, pm_ref, w_ref, b_ref,
                             or_ref, oi_ref):
    xr = xr_ref[...].astype(jnp.float32)          # (tt, D)
    xi = xi_ref[...].astype(jnp.float32)          # (tt, D)
    d = xr.shape[-1]

    # phases p = atan2(xi+eps, xr+eps);  cos p = xp/r, sin p = yp/r.
    xp = xr + 1e-8
    yp = xi + 1e-8
    inv_r = jax.lax.rsqrt(xp * xp + yp * yp + 1e-30)
    ur = xp * inv_r                               # cos(p), unit magnitude
    ui = yp * inv_r                               # sin(p)

    # coherence = mean_{i,j} cos(p_j - p_i) = ((sum cos p)^2 + (sum sin p)^2)/D^2
    sc = jnp.sum(ur, axis=-1, keepdims=True)      # (tt, 1)
    ss = jnp.sum(ui, axis=-1, keepdims=True)      # (tt, 1)
    coherence = (sc * sc + ss * ss) * (1.0 / float(d * d))

    # phase adjustment = (x_real @ phase_matrix) * coherence_factor * (1 - coherence)
    cf = cf_ref[0]                                # scalar from SMEM
    pa = jnp.dot(xr, pm_ref[...], preferred_element_type=jnp.float32)
    pa = pa * (cf * (1.0 - coherence))

    # Complex rotation.  Rotation preserves magnitude, so rotating the unit
    # vectors (ur, ui) folds the reference's divide-by-sqrt(nr^2+ni^2+eps)
    # renormalization into inv_r: one fewer rsqrt + ~5 VALU ops per element.
    # Outputs differ from the PyTorch reference only for near-zero |(xr, xi)|
    # (eps-scale inputs), which is within the test tolerance.
    cpa = jnp.cos(pa)
    spa = jnp.sin(pa)
    nr = ur * cpa - ui * spa
    ni = ur * spa + ui * cpa

    # LayerNorm(dim, eps=1e-8) applied to both outputs; w/b loaded once.
    w = w_ref[...]                                # (1, D)
    b = b_ref[...]                                # (1, D)
    inv_d = 1.0 / float(d)

    def layer_norm(v):
        mu = jnp.sum(v, axis=-1, keepdims=True) * inv_d
        c = v - mu
        var = jnp.sum(c * c, axis=-1, keepdims=True) * inv_d
        return c * jax.lax.rsqrt(var + 1e-8) * w + b

    or_ref[...] = layer_norm(nr).astype(or_ref.dtype)
    oi_ref[...] = layer_norm(ni).astype(oi_ref.dtype)


def _choose_token_tile(t, dim, itemsize, *, tile_cap=512,
                       vmem_budget=44 * 1024 * 1024):
    """Largest token tile that divides t, obeys the (8,128) sublane rule and
    keeps the per-step VMEM footprint within budget; prefers >= 2 grid steps."""
    def footprint(tt):
        io = 4 * 2 * tt * dim * itemsize          # 2 in + 2 out, double-buffered
        pm = dim * dim * 4                        # phase_matrix, single-buffered
        return io + pm + 4 * dim * 4              # + LN params
    cands = [d for d in range(1, t + 1)
             if t % d == 0 and (d % 8 == 0 or d == t)]
    good = [d for d in cands if d <= tile_cap and footprint(d) <= vmem_budget]
    tt = max(good) if good else min(cands)
    half = t // 2
    if tt == t and half in cands and footprint(half) <= vmem_budget:
        tt = half                                  # keep >=2 steps for v7x's 2 TCs
    return tt


def quantum_coherence_layer(x_real, x_imag, phase_matrix, coherence_factor,
                            ln_w, ln_b, *, tile_t=512):
    orig_shape = x_real.shape
    dim = orig_shape[-1]
    io_dtype = x_real.dtype                       # keep caller's dtype in HBM
    xr = x_real.reshape(-1, dim)
    xi = x_imag.reshape(-1, dim)
    t = xr.shape[0]
    itemsize = jnp.dtype(io_dtype).itemsize
    tt = _choose_token_tile(t, dim, itemsize, tile_cap=tile_t)
    grid = (t // tt,)

    footprint = 4 * 2 * tt * dim * itemsize + dim * dim * 4 + 4 * dim * 4
    vmem_limit = int(min(64 * 2**20, max(32 * 2**20, footprint * 3 // 2)))
    # TODO(synk): for very large dim (>~2k) the (dim, dim) phase_matrix should be
    # K-blocked over a reduction grid axis instead of held resident in VMEM.

    const = dict(pipeline_mode=pl.Buffered(1))    # grid-invariant operands
    call = pl.pallas_call(
        quantum_coherence_kernel,
        out_shape=(jax.ShapeDtypeStruct((t, dim), io_dtype),
                   jax.ShapeDtypeStruct((t, dim), io_dtype)),
        grid_spec=pltpu.PrefetchScalarGridSpec(
            num_scalar_prefetch=0,
            grid=grid,
            in_specs=[
                pl.BlockSpec(memory_space=pltpu.MemorySpace.SMEM),    # cf (1,)
                pl.BlockSpec((tt, dim), lambda i: (i, 0)),            # x_real tile
                pl.BlockSpec((tt, dim), lambda i: (i, 0)),            # x_imag tile
                pl.BlockSpec((dim, dim), lambda i: (0, 0), **const),  # phase_matrix
                pl.BlockSpec((1, dim), lambda i: (0, 0), **const),    # LN weight
                pl.BlockSpec((1, dim), lambda i: (0, 0), **const),    # LN bias
            ],
            out_specs=[
                pl.BlockSpec((tt, dim), lambda i: (i, 0)),
                pl.BlockSpec((tt, dim), lambda i: (i, 0)),
            ],
        ),
        compiler_params=pltpu.CompilerParams(
            dimension_semantics=("parallel",),
            vmem_limit_bytes=vmem_limit),
    )
    out_r, out_i = call(coherence_factor.reshape(1).astype(jnp.float32),
                        xr, xi,
                        phase_matrix.astype(jnp.float32),
                        ln_w.reshape(1, dim).astype(jnp.float32),
                        ln_b.reshape(1, dim).astype(jnp.float32))
    return out_r.reshape(orig_shape), out_i.reshape(orig_shape)


def reference(x_real, x_imag, pm, cf, w, b):
    """Plain-JAX reference mirroring the PyTorch forward literally."""
    phases = jnp.arctan2(x_imag + 1e-8, x_real + 1e-8)
    diffs = phases[..., None, :] - phases[..., :, None]
    coherence = jnp.mean(jnp.cos(diffs), axis=(-1, -2))[..., None]
    pa = jnp.dot(x_real, pm, precision=jax.lax.Precision.HIGHEST)
    pa = pa * cf * (1.0 - coherence)
    nr = x_real * jnp.cos(pa) - x_imag * jnp.sin(pa)
    ni = x_real * jnp.sin(pa) + x_imag * jnp.cos(pa)
    norm = jnp.sqrt(nr * nr + ni * ni + 1e-8)
    nr, ni = nr / norm, ni / norm

    def ln(v):
        mu = jnp.mean(v, -1, keepdims=True)
        var = jnp.mean((v - mu) ** 2, -1, keepdims=True)
        return (v - mu) / jnp.sqrt(var + 1e-8) * w + b

    return ln(nr), ln(ni)


def _run_case(key, shape):
    B, S, D = shape
    k1, k2, k3 = jax.random.split(key, 3)
    x_real = jax.random.normal(k1, (B, S, D), jnp.float32)
    x_imag = jax.random.normal(k2, (B, S, D), jnp.float32)
    phase_matrix = jax.random.normal(k3, (D, D), jnp.float32) * 0.02
    coherence_factor = jnp.ones((1,), jnp.float32) * 0.1
    ln_w = jnp.ones((D,), jnp.float32)
    ln_b = jnp.zeros((D,), jnp.float32)

    out_r, out_i = quantum_coherence_layer(
        x_real, x_imag, phase_matrix, coherence_factor, ln_w, ln_b)
    jax.block_until_ready((out_r, out_i))

    ref_r, ref_i = reference(x_real, x_imag, phase_matrix,
                             coherence_factor, ln_w, ln_b)
    np.testing.assert_allclose(np.asarray(out_r), np.asarray(ref_r),
                               rtol=2e-2, atol=2e-2)
    np.testing.assert_allclose(np.asarray(out_i), np.asarray(ref_i),
                               rtol=2e-2, atol=2e-2)


if __name__ == "__main__":
    key = jax.random.PRNGKey(0)
    k_a, k_b = jax.random.split(key)

    # Small shape implied by the module (batch=2, seq=8, hidden=32).
    _run_case(k_a, (2, 8, 32))
    # Lane-aligned dim and a multi-step grid (exercises the tiled path).
    _run_case(k_b, (2, 64, 256))

    print("KERNEL_OK")
</pallas_src>

<mosaic_0001>
module attributes {stable_mosaic.version = 11 : i64} {
  func.func @quantum_coherence_kernel(%arg0: i32, %arg1: memref<1xf32, #tpu.memory_space<smem>>, %arg2: memref<8x32xf32, #tpu.memory_space<vmem>>, %arg3: memref<8x32xf32, #tpu.memory_space<vmem>>, %arg4: memref<32x32xf32, #tpu.memory_space<vmem>>, %arg5: memref<1x32xf32, #tpu.memory_space<vmem>>, %arg6: memref<1x32xf32, #tpu.memory_space<vmem>>, %arg7: memref<8x32xf32, #tpu.memory_space<vmem>>, %arg8: memref<8x32xf32, #tpu.memory_space<vmem>>) attributes {dimension_semantics = [#tpu.dimension_semantics<parallel>], iteration_bounds = array<i64: 2>, scalar_prefetch = 0 : i64, scratch_operands = 0 : i64, tpu.core_type = #tpu.core_type<tc>, window_params = [{transform_indices = @transform_0, window_bounds = array<i64: 1>}, {transform_indices = @transform_1, window_bounds = array<i64: 8, 32>}, {transform_indices = @transform_2, window_bounds = array<i64: 8, 32>}, {pipeline_mode = #tpu.pipeline_mode<synchronous>, transform_indices = @transform_3, window_bounds = array<i64: 32, 32>}, {pipeline_mode = #tpu.pipeline_mode<synchronous>, transform_indices = @transform_4, window_bounds = array<i64: 1, 32>}, {pipeline_mode = #tpu.pipeline_mode<synchronous>, transform_indices = @transform_5, window_bounds = array<i64: 1, 32>}, {transform_indices = @transform_6, window_bounds = array<i64: 8, 32>}, {transform_indices = @transform_7, window_bounds = array<i64: 8, 32>}]} {
    %c0 = arith.constant 0 : index
    %c0_0 = arith.constant 0 : index
    %0 = vector.load %arg2[%c0, %c0_0] : memref<8x32xf32, #tpu.memory_space<vmem>>, vector<8x32xf32>
    %c0_1 = arith.constant 0 : index
    %c0_2 = arith.constant 0 : index
    %1 = vector.load %arg3[%c0_1, %c0_2] : memref<8x32xf32, #tpu.memory_space<vmem>>, vector<8x32xf32>
    %cst = arith.constant 9.99999993E-9 : f32
    %2 = vector.broadcast %cst : f32 to vector<8x32xf32>
    %3 = arith.addf %0, %2 : vector<8x32xf32>
    %cst_3 = arith.constant 9.99999993E-9 : f32
    %4 = vector.broadcast %cst_3 : f32 to vector<8x32xf32>
    %5 = arith.addf %1, %4 : vector<8x32xf32>
    %6 = arith.mulf %3, %3 : vector<8x32xf32>
    %7 = arith.mulf %5, %5 : vector<8x32xf32>
    %8 = arith.addf %6, %7 : vector<8x32xf32>
    %cst_4 = arith.constant 1.000000e-30 : f32
    %9 = vector.broadcast %cst_4 : f32 to vector<8x32xf32>
    %10 = arith.addf %8, %9 : vector<8x32xf32>
    %11 = math.rsqrt %10 : vector<8x32xf32>
    %12 = arith.mulf %3, %11 : vector<8x32xf32>
    %13 = arith.mulf %5, %11 : vector<8x32xf32>
    %cst_5 = arith.constant dense<0.000000e+00> : vector<8xf32>
    %14 = vector.multi_reduction <add>, %12, %cst_5 [1] : vector<8x32xf32> to vector<8xf32>
    %15 = vector.shape_cast %14 : vector<8xf32> to vector<8x1xf32>
    %cst_6 = arith.constant dense<0.000000e+00> : vector<8xf32>
    %16 = vector.multi_reduction <add>, %13, %cst_6 [1] : vector<8x32xf32> to vector<8xf32>
    %17 = vector.shape_cast %16 : vector<8xf32> to vector<8x1xf32>
    %18 = arith.mulf %15, %15 : vector<8x1xf32>
    %19 = arith.mulf %17, %17 : vector<8x1xf32>
    %20 = arith.addf %18, %19 : vector<8x1xf32>
    %cst_7 = arith.constant 9.765625E-4 : f32
    %21 = vector.broadcast %cst_7 : f32 to vector<8x1xf32>
    %22 = arith.mulf %20, %21 : vector<8x1xf32>
    %c0_8 = arith.constant 0 : index
    %23 = memref.load %arg1[%c0_8] : memref<1xf32, #tpu.memory_space<smem>>
    %c0_9 = arith.constant 0 : index
    %c0_10 = arith.constant 0 : index
    %24 = vector.load %arg4[%c0_9, %c0_10] : memref<32x32xf32, #tpu.memory_space<vmem>>, vector<32x32xf32>
    %cst_11 = arith.constant dense<0.000000e+00> : vector<8x32xf32>
    %25 = tpu.matmul %0, %24, %cst_11 {dimension_numbers = #tpu.dot_dimension_numbers<[1], [0], [0], [1], [0, 0, 1, 1], [], []>} : vector<8x32xf32>, vector<32x32xf32>, vector<8x32xf32> -> vector<8x32xf32>
    %cst_12 = arith.constant 1.000000e+00 : f32
    %26 = vector.broadcast %cst_12 : f32 to vector<8x1xf32>
    %27 = arith.subf %26, %22 : vector<8x1xf32>
    %28 = vector.broadcast %23 : f32 to vector<8x1xf32>
    %29 = arith.mulf %28, %27 : vector<8x1xf32>
    %30 = vector.broadcast %29 : vector<8x1xf32> to vector<8x32xf32>
    %31 = arith.mulf %25, %30 : vector<8x32xf32>
    %32 = math.cos %31 : vector<8x32xf32>
    %33 = math.sin %31 : vector<8x32xf32>
    %34 = arith.mulf %12, %32 : vector<8x32xf32>
    %35 = arith.mulf %13, %33 : vector<8x32xf32>
    %36 = arith.subf %34, %35 : vector<8x32xf32>
    %37 = arith.mulf %12, %33 : vector<8x32xf32>
    %38 = arith.mulf %13, %32 : vector<8x32xf32>
    %39 = arith.addf %37, %38 : vector<8x32xf32>
    %c0_13 = arith.constant 0 : index
    %c0_14 = arith.constant 0 : index
    %40 = vector.load %arg5[%c0_13, %c0_14] : memref<1x32xf32, #tpu.memory_space<vmem>>, vector<1x32xf32>
    %c0_15 = arith.constant 0 : index
    %c0_16 = arith.constant 0 : index
    %41 = vector.load %arg6[%c0_15, %c0_16] : memref<1x32xf32, #tpu.memory_space<vmem>>, vector<1x32xf32>
    %cst_17 = arith.constant dense<0.000000e+00> : vector<8xf32>
    %42 = vector.multi_reduction <add>, %36, %cst_17 [1] : vector<8x32xf32> to vector<8xf32>
    %43 = vector.shape_cast %42 : vector<8xf32> to vector<8x1xf32>
    %cst_18 = arith.constant 3.125000e-02 : f32
    %44 = vector.broadcast %cst_18 : f32 to vector<8x1xf32>
    %45 = arith.mulf %43, %44 : vector<8x1xf32>
    %46 = vector.broadcast %45 : vector<8x1xf32> to vector<8x32xf32>
    %47 = arith.subf %36, %46 : vector<8x32xf32>
    %48 = arith.mulf %47, %47 : vector<8x32xf32>
    %cst_19 = arith.constant dense<0.000000e+00> : vector<8xf32>
    %49 = vector.multi_reduction <add>, %48, %cst_19 [1] : vector<8x32xf32> to vector<8xf32>
    %50 = vector.shape_cast %49 : vector<8xf32> to vector<8x1xf32>
    %cst_20 = arith.constant 3.125000e-02 : f32
    %51 = vector.broadcast %cst_20 : f32 to vector<8x1xf32>
    %52 = arith.mulf %50, %51 : vector<8x1xf32>
    %cst_21 = arith.constant 9.99999993E-9 : f32
    %53 = vector.broadcast %cst_21 : f32 to vector<8x1xf32>
    %54 = arith.addf %52, %53 : vector<8x1xf32>
    %55 = math.rsqrt %54 : vector<8x1xf32>
    %56 = vector.broadcast %55 : vector<8x1xf32> to vector<8x32xf32>
    %57 = arith.mulf %47, %56 : vector<8x32xf32>
    %58 = vector.broadcast %40 : vector<1x32xf32> to vector<8x32xf32>
    %59 = arith.mulf %57, %58 : vector<8x32xf32>
    %60 = vector.broadcast %41 : vector<1x32xf32> to vector<8x32xf32>
    %61 = arith.addf %59, %60 : vector<8x32xf32>
    %c0_22 = arith.constant 0 : index
    %c0_23 = arith.constant 0 : index
    %62 = vector.load %arg7[%c0_22, %c0_23] : memref<8x32xf32, #tpu.memory_space<vmem>>, vector<8x32xf32>
    tpu.vector_store %arg7[%c0_22, %c0_23], %61 {strides = array<i32>} : memref<8x32xf32, #tpu.memory_space<vmem>>, vector<8x32xf32>,
    %cst_24 = arith.constant dense<0.000000e+00> : vector<8xf32>
    %63 = vector.multi_reduction <add>, %39, %cst_24 [1] : vector<8x32xf32> to vector<8xf32>
    %64 = vector.shape_cast %63 : vector<8xf32> to vector<8x1xf32>
    %cst_25 = arith.constant 3.125000e-02 : f32
    %65 = vector.broadcast %cst_25 : f32 to vector<8x1xf32>
    %66 = arith.mulf %64, %65 : vector<8x1xf32>
    %67 = vector.broadcast %66 : vector<8x1xf32> to vector<8x32xf32>
    %68 = arith.subf %39, %67 : vector<8x32xf32>
    %69 = arith.mulf %68, %68 : vector<8x32xf32>
    %cst_26 = arith.constant dense<0.000000e+00> : vector<8xf32>
    %70 = vector.multi_reduction <add>, %69, %cst_26 [1] : vector<8x32xf32> to vector<8xf32>
    %71 = vector.shape_cast %70 : vector<8xf32> to vector<8x1xf32>
    %cst_27 = arith.constant 3.125000e-02 : f32
    %72 = vector.broadcast %cst_27 : f32 to vector<8x1xf32>
    %73 = arith.mulf %71, %72 : vector<8x1xf32>
    %cst_28 = arith.constant 9.99999993E-9 : f32
    %74 = vector.broadcast %cst_28 : f32 to vector<8x1xf32>
    %75 = arith.addf %73, %74 : vector<8x1xf32>
    %76 = math.rsqrt %75 : vector<8x1xf32>
    %77 = vector.broadcast %76 : vector<8x1xf32> to vector<8x32xf32>
    %78 = arith.mulf %68, %77 : vector<8x32xf32>
    %79 = vector.broadcast %40 : vector<1x32xf32> to vector<8x32xf32>
    %80 = arith.mulf %78, %79 : vector<8x32xf32>
    %81 = vector.broadcast %41 : vector<1x32xf32> to vector<8x32xf32>
    %82 = arith.addf %80, %81 : vector<8x32xf32>
    %c0_29 = arith.constant 0 : index
    %c0_30 = arith.constant 0 : index
    %83 = vector.load %arg8[%c0_29, %c0_30] : memref<8x32xf32, #tpu.memory_space<vmem>>, vector<8x32xf32>
    tpu.vector_store %arg8[%c0_29, %c0_30], %82 {strides = array<i32>} : memref<8x32xf32, #tpu.memory_space<vmem>>, vector<8x32xf32>,
    return
  }
  func.func @transform_0(%arg0: i32) -> i32 {
    %c0_i32 = arith.constant 0 : i32
    %c0_i32_0 = arith.constant 0 : i32
    return %c0_i32 : i32
  }
  func.func @transform_1(%arg0: i32) -> (i32, i32) {
    %c0_i32 = arith.constant 0 : i32
    %c0_i32_0 = arith.constant 0 : i32
    return %arg0, %c0_i32 : i32, i32
  }
  func.func @transform_2(%arg0: i32) -> (i32, i32) {
    %c0_i32 = arith.constant 0 : i32
    %c0_i32_0 = arith.constant 0 : i32
    return %arg0, %c0_i32 : i32, i32
  }
  func.func @transform_3(%arg0: i32) -> (i32, i32) {
    %c0_i32 = arith.constant 0 : i32
    %c0_i32_0 = arith.constant 0 : i32
    %c0_i32_1 = arith.constant 0 : i32
    return %c0_i32, %c0_i32_0 : i32, i32
  }
  func.func @transform_4(%arg0: i32) -> (i32, i32) {
    %c0_i32 = arith.constant 0 : i32
    %c0_i32_0 = arith.constant 0 : i32
    %c0_i32_1 = arith.constant 0 : i32
    return %c0_i32, %c0_i32_0 : i32, i32
  }
  func.func @transform_5(%arg0: i32) -> (i32, i32) {
    %c0_i32 = arith.constant 0 : i32
    %c0_i32_0 = arith.constant 0 : i32
    %c0_i32_1 = arith.constant 0 : i32
    return %c0_i32, %c0_i32_0 : i32, i32
  }
  func.func @transform_6(%arg0: i32) -> (i32, i32) {
    %c0_i32 = arith.constant 0 : i32
    %c0_i32_0 = arith.constant 0 : i32
    return %arg0, %c0_i32 : i32, i32
  }
  func.func @transform_7(%arg0: i32) -> (i32, i32) {
    %c0_i32 = arith.constant 0 : i32
    %c0_i32_0 = arith.constant 0 : i32
    return %arg0, %c0_i32 : i32, i32
  }
}

</mosaic_0001>

<bundles_post_ra>
// kernel: tpu_custom_call.1
= control target key start
LH: loop header
LB: loop body
LE: loop exit
PB: predicated region body
PF: predicated region fallthrough
CT: control target
= control target key end

     0   :  { %s1552_s0 = inlined_call_operand.<no memory space> [shape: f32[1], index: 0, kind: input, shape index: {}]   ;;  %s1553_s1 = inlined_call_operand.hbm [shape: f32[16,32], index: 1, kind: input, shape index: {}]   ;;  %s1554_s2 = inlined_call_operand.hbm [shape: f32[16,32], index: 2, kind: input, shape index: {}]   ;;  %s1555_s3 = inlined_call_operand.hbm [shape: f32[32,32], index: 3, kind: input, shape index: {}]   ;;  %s1556_s4 = inlined_call_operand.vmem [shape: f32[1,32], index: 4, kind: input, shape index: {}]   ;;  %s1557_s5 = inlined_call_operand.vmem [shape: f32[1,32], index: 5, kind: input, shape index: {}]   ;;  %s1558_s6 = inlined_call_operand.hbm [shape: f32[16,32], index: 6, kind: output, shape index: {0}]   ;;  %s1559_s7 = inlined_call_operand.hbm [shape: f32[16,32], index: 7, kind: output, shape index: {1}]  }
   0x1   :  { %1565 = sst [smem:[#allocation19_spill]] %s1555_s3 }
   0x2   :  { %13 = sst [smem:[#allocation2]] %s1552_s0 }
   0x3   :  { %14 = vsyncpa [#allocation4], 0 }
   0x4   :  { %16 = vsyncpa [#allocation4 + $0x1], 0 }
   0x5   :  { %17 = vsyncpa [#allocation7], 0 }
   0x6   :  { %19 = vsyncpa [#allocation7 + $0x1], 0 }
   0x7   :  { %20 = vsyncpa [#allocation5], 0 }
   0x8   :  { %22 = vsyncpa [#allocation5 + $0x1], 0 }
   0x9   :  { %23 = vsyncpa [#allocation11], 0 }
   0xa   :  { %25 = vsyncpa [#allocation11 + $0x1], 0  ;;  %s1268_s26 = smov 0   ;;  %s1270_s27 = smov 0  }
   0xb   :  { %s1272_s28 = smov 0   ;;  %s1274_s29 = smov 0  }
   0xc LB: > { %1566 = sst [smem:[#allocation17_spill]] %s1204_s28  ;;  %s1289_s0 = sadd.s32 4294967295, %s1208_s29   ;;  %s1208_s29 = sphi %s1274_s29, %s1587_s29   ;;  %s1204_s28 = sphi %s1272_s28, %s1584_s28   ;;  %s1200_s27 = sphi %s1270_s27, %s1586_s27   ;;  %s1196_s26 = sphi %s1268_s26, %s1585_s26  }
   0xd   : > { %s886_s30 = sadd.s32 4294967294, %s1208_s29   ;;  %p72_p0 = scmp.ne.s32.totalorder %s1200_s27, %s1196_s26 }
   0xe   : > { %p1561_p1 = scmp.eq.s32.totalorder %s1289_s0, 0  ;;  %p191_p3 = scmp.eq.s32.totalorder %s886_s30, 1 }
   0xf   : > { %p887_p5 = scmp.ge.s32.totalorder %s1208_s29, 1  ;;  %p224_p7 = scmp.lt.s32.totalorder %s1208_s29, 3 }
  0x10   : > { %p1298_p4 = por %p1561_p1, %p72_p0  ;;  %p1303_p6 = por %p191_p3, %p72_p0 }
  0x11   : > { %p1308_p8 = pnand %p887_p5, %p224_p7  ;;  %s1210_s11 = smov [#allocation8]  }
  0x12   : > { %s1567_s8 = scalar_select %p1298_p4, 1, 0 }
  0x13   : > { %s1568_s9 = scalar_select %p1303_p6, 1, 0 }
  0x14   : > { %s1569_s10 = scalar_select %p1308_p8, 1, 0 }
  0x15   : > { %s239_s12 = sshll.u32 %s1210_s11, 4  ;;  %p949_p9 = pneg %p1308_p8  ;;  %s240_s12 = int_to_ptr.vmem [resolvable:$true] %s239_s12 }
  0x16   : > { %s1322_s14 = sadd.s32 1, %s1208_s29   ;;  %s59_s15 = sadd.s32 1, %s1204_s28 }
  0x17   : > { %p1317_p11 = pnand %p949_p9, %p1561_p1  ;;  %s56_s16 = ssub.s32 %s1208_s29, %s1322_s14 }
  0x18   : > { %s1035_s17 = scalar_lea.vmem %s240_s12, 512  ;;  %p1043_p5 = scmp.lt.s32.totalorder %s240_s12, %s240_s12 }
  0x19   : > { %p1026_p12 = pneg %p1317_p11  ;;  %p1036_p13 = scmp.ne.s32.totalorder %s240_s12, %s1035_s17 }
  0x1a   : > { %p1044_p7 = scmp.lt.s32.totalorder %s1035_s17, %s1035_s17 }
  0x1b   : > { %p1038_p0 = pnand %p1036_p13, %p1026_p12 }
  0x1c   : > { %p1045_p10 = por %p1044_p7, %p1043_p5 }
  0x1d   : > { %p1039_p3 = pneg %p1038_p0 }
  0x1f   : > { %p1046_p2 = pnand %p1045_p10, %p1039_p3 }
  0x21   : > { %1049 = shalt.err (!%p1046_p2)
}
  0x22   : > { %s1211_s18 = smov 128   ;;  %s1212_s19 = smov 8  }
  0x23   : > { %s1571_s3 = sld [smem:[#allocation19_spill]]  ;;  %p57_p9 = scmp.eq.s32.totalorder %s56_s16, 0 }
  0x24   : > { %p66_p12 = scmp.ne.s32.totalorder %s1204_s28, %s1200_s27  ;;  %p67_p10 = scmp.eq.s32.totalorder %s1208_s29, 0 }
  0x25   : > { %p968_p2 = scmp.lt.s32.totalorder %s1208_s29, 2  ;;  %p1573_p0 = scmp.eq.s32.totalorder %s1289_s0, 1 }
  0x26   : > { %s1339_s22 = scalar_select %p57_p9, %s1204_s28, %s59_s15  }
  0x27   : > { %p68_p13 = por %p67_p10, %p66_p12  ;;  %p1343_p3 = por %p1573_p0, %p66_p12 }
  0x28   : > { %1572 = sst [smem:[#allocation18_spill]] %s1339_s22  ;;  %s259_s24 = sand.u32 1, %s1204_s28  }
  0x29   : > { %952 = dma.hbm_to_vmem [thread:$0]  (!%p1317_p11), %s1571_s3, 512, %s240_s12, [#allocation7], %s1211_s18, %s1211_s18, %s1212_s19  }
  0x2a   : > { %s1574_s23 = scalar_select %p1343_p3, 1, 0 }
  0x2b   : > { %s891_s25 = sshll.u32 %s1208_s29, 7  ;;  %s1349_s30 = sshll.u32 %s259_s24, 3 }
  0x2c   : > { %s1354_s12 = scalar_lea.hbm %s1553_s1, %s891_s25  ;;  %s263_s15 = scalar_lea.vmem [#allocation3], %s1349_s30 }
  0x2d   : > { %s270_s16 = sshll.u32 %s263_s15, 4  ;;  %p1357_p11 = pnand %p968_p2, %p68_p13  ;;  %s271_s16 = int_to_ptr.vmem [resolvable:$true] %s270_s16 }
  0x2e   : > { %s1364_s20 = scalar_lea.hbm %s1554_s2, %s891_s25  ;;  %s260_s21 = scalar_lea.sflag [#allocation4], %s259_s24 }
  0x2f   : > { %s1050_s11 = scalar_lea.hbm %s1354_s12, 128  ;;  %p1052_p7 = pneg %p1357_p11 }
  0x30   : > { %p1051_p5 = scmp.ne.s32.totalorder %s1354_s12, %s1050_s11  ;;  %s1055_s3 = scalar_lea.hbm %s1553_s1, 256 }
  0x31   : > { %p1056_p10 = scmp.lt.s32.totalorder %s1354_s12, %s1553_s1  ;;  %p1057_p2 = scmp.lt.s32.totalorder %s1055_s3, %s1050_s11 }
  0x32   : > { %p1053_p9 = pnand %p1052_p7, %p1051_p5 }
  0x33   : > { %p1058_p13 = por %p1057_p2, %p1056_p10 }
  0x34   : > { %p1054_p12 = pneg %p1053_p9 }
  0x36   : > { %p1059_p0 = pnand %p1058_p13, %p1054_p12 }
  0x38   : > { %1062 = shalt.err (!%p1059_p0)
}
  0x39   : > { %s1063_s24 = scalar_lea.vmem %s271_s16, 128  ;;  %s1213_s25 = smov [#allocation3]  }
  0x3a   : > { %p1064_p1 = scmp.ne.s32.totalorder %s271_s16, %s1063_s24  ;;  %s1068_s18 = sshll.u32 %s1213_s25, 4  ;;  %s1069_s18 = int_to_ptr.vmem [resolvable:$false] %s1068_s18 }
  0x3b   : > { %s1070_s19 = scalar_lea.vmem %s1069_s18, 256  ;;  %p1071_p9 = scmp.lt.s32.totalorder %s271_s16, %s1069_s18 }
  0x3c   : > { %p1066_p6 = pnand %p1064_p1, %p1052_p7  ;;  %p1072_p3 = scmp.lt.s32.totalorder %s1070_s19, %s1063_s24 }
  0x3e   : > { %p1067_p5 = pneg %p1066_p6  ;;  %p1073_p4 = por %p1072_p3, %p1071_p9 }
  0x40   : > { %p1074_p8 = pnand %p1073_p4, %p1067_p5 }
  0x42   : > { %1077 = shalt.err (!%p1074_p8)
}
  0x43   : > { %956 = dma.hbm_to_vmem [thread:$0]  (!%p1357_p11), %s1354_s12, 128, %s271_s16, %s260_s21  }
  0x44   : > { %s277_s3 = sand.u32 1, %s1208_s29   ;;  %s281_s28 = scalar_lea.vmem [#allocation6], %s1349_s30 }
  0x45   : > { %s288_s22 = sshll.u32 %s281_s28, 4  ;;  %s278_s11 = scalar_lea.sflag [#allocation7], %s277_s3  ;;  %s289_s22 = int_to_ptr.vmem [resolvable:$true] %s288_s22 }
  0x46   : > { %s1078_s13 = scalar_lea.hbm %s1364_s20, 128  ;;  %s1083_s25 = scalar_lea.hbm %s1554_s2, 256 }
  0x47   : > { %p1079_p1 = scmp.ne.s32.totalorder %s1364_s20, %s1078_s13  ;;  %p1084_p8 = scmp.lt.s32.totalorder %s1364_s20, %s1554_s2 }
  0x48   : > { %p1085_p3 = scmp.lt.s32.totalorder %s1083_s25, %s1078_s13 }
  0x49   : > { %p1081_p4 = pnand %p1079_p1, %p1052_p7 }
  0x4a   : > { %p1086_p12 = por %p1085_p3, %p1084_p8 }
  0x4b   : > { %p1082_p6 = pneg %p1081_p4 }
  0x4d   : > { %p1087_p10 = pnand %p1086_p12, %p1082_p6 }
  0x4f   : > { %1090 = shalt.err (!%p1087_p10)
}
  0x50   : > { %s1091_s30 = scalar_lea.vmem %s289_s22, 128  ;;  %s1214_s12 = smov [#allocation6]  }
  0x51   : > { %p1092_p2 = scmp.ne.s32.totalorder %s289_s22, %s1091_s30  ;;  %s1096_s16 = sshll.u32 %s1214_s12, 4  ;;  %s1097_s16 = int_to_ptr.vmem [resolvable:$false] %s1096_s16 }
  0x52   : > { %s1098_s21 = scalar_lea.vmem %s1097_s16, 256  ;;  %p1099_p5 = scmp.lt.s32.totalorder %s289_s22, %s1097_s16 }
  0x53   : > { %p1094_p13 = pnand %p1092_p2, %p1052_p7  ;;  %p1100_p9 = scmp.lt.s32.totalorder %s1098_s21, %s1091_s30 }
  0x55   : > { %p1095_p0 = pneg %p1094_p13  ;;  %p1101_p1 = por %p1100_p9, %p1099_p5 }
  0x57   : > { %p1102_p4 = pnand %p1101_p1, %p1095_p0 }
  0x59   : > { %1105 = shalt.err (!%p1102_p4)
}
  0x5a   : > { %959 = dma.hbm_to_vmem [thread:$0]  (!%p1357_p11), %s1364_s20, 128, %s289_s22, %s278_s11  }
  0x5b   : > { %p1576_p6 = scmp.ne.s32.totalorder %s1569_s10, 0 }
  0x5c   : > { %s1409_s3 = sand.u32 (!%p1576_p6), 1, %s1200_s27   ;;  %p1577_p7 = scmp.ne.s32.totalorder (!%p1576_p6), %s1567_s8, 0 }
  0x5d   : > { %297 = sbr.rel (%p1576_p6) target bundleno = 738 (0x2e2), region = 44  ;;  %s1412_s28 = sshll.u32 (!%p1576_p6), %s1409_s3, 3 }
  0x5e   : > { %s300_s13 = scalar_lea.sflag (!%p1576_p6), [#allocation4], %s1409_s3  ;;  %s303_s15 = scalar_lea.vmem (!%p1576_p6), [#allocation3], %s1412_s28 }
  0x62   : > { %1175 = dma.done.wait (%p1577_p7), %s300_s13, 128  }
  0x63   : > { %1177 = vsyncadd (%p1577_p7), %s300_s13, 4294967168  ;;  %s308_s10 = sand.u32 1, %s1289_s0   ;;  %s312_s20 = scalar_lea.vmem [#allocation6], %s1412_s28 }
  0x64   : > { %s309_s17 = scalar_lea.sflag [#allocation7], %s308_s10 }
  0x65   : > { %1179 = dma.done.wait (%p1577_p7), %s309_s17, 128  }
  0x66   : > { %1181 = vsyncadd (%p1577_p7), %s309_s17, 4294967168  ;;  %p1578_p11 = scmp.eq.s32.totalorder %s1289_s0, 0 }
  0x68   : > { %1183 = dma.done.wait (%p1578_p11), [#allocation7], 512   ;;  %p1579_p8 = pmov %p1578_p11 }
  0x69   : > { %v1215_v0 = vmov 0.0   ;;  %vm1216_vm0 = vmmov 0   ;;  %v383_v1 = vld [vmem:[#allocation8 + $0x18] sm:$0xff]  ;;  %v382_v2 = vld [vmem:[#allocation8 + $0x10] sm:$0xff]  ;;  %v357_v3 = vld [vmem:[%s303_s15] sm:$0xff]  ;;  %vm368_vm1 = vcmask 261120  }
  0x6a   : > { %1185 = vsyncadd (%p1579_p8), [#allocation7], 4294966784  ;;  %922 = vmatprep.subr.mxu0 %v1215_v0  ;;  %930 = vmatprep.mubr.msk.f32.mxu0 %vm1216_vm0, %v1215_v0  ;;  %v358_v4 = vld [vmem:[%s312_s20] sm:$0xff]  ;;  %v381_v5 = vld [vmem:[#allocation8 + $0x8] sm:$0xff]  ;;  %v359_v6 = vadd.f32 1e-08, %v357_v3 }
  0x6b   : > { %923 = vmatpush3.msra.mxu0 %v383_v1  ;;  %v360_v7 = vadd.f32 1e-08, %v358_v4  ;;  %v380_v8 = vld [vmem:[#allocation8] sm:$0xff]  ;;  %s379_s8 = sld [smem:[#allocation2]]  ;;  %v1217_v40 = vmov 683565275  }
  0x6c   : > { %924 = vmatprep.subr.mxu0 %v1215_v0  ;;  %v361_v9 = vmul.f32 %v359_v6, %v359_v6  ;;  %v1218_v42 = vmov 2475754826   ;;  %v1219_v45 = vmov 2131351028   ;;  %v1220_v48 = vmov 2102212464  }
  0x6d   : > { %925 = vmatpush3.msra.mxu0 %v382_v2  ;;  %v362_v10 = vmul.f32 %v360_v7, %v360_v7  ;;  %v1221_v51 = vmov 920167782   ;;  %v1222_v54 = vmov 1326507024   ;;  %s913_s18 = sshll.u32 %s1289_s0, 7  ;;  %s349_s19 = scalar_lea.vmem [#allocation9], %s1412_s28 }
  0x6e   : > { %926 = vmatprep.subr.mxu0 %v1215_v0  ;;  %s739_s30 = sshll.u32 %s349_s19, 4  ;;  %s1481_s21 = scalar_lea.hbm %s1558_s6, %s913_s18  ;;  %s1483_s30 = int_to_ptr.vmem [resolvable:$true] %s739_s30 }
  0x6f   : > { %927 = vmatpush3.msra.mxu0 %v381_v5  ;;  %v363_v11 = vadd.f32 %v362_v10, %v361_v9  ;;  %s356_s13 = scalar_lea.vmem [#allocation10], %s1412_s28  ;;  %s721_s10 = scalar_lea.sflag [#allocation5], %s1409_s3 }
  0x70   : > { %928 = vmatprep.subr.mxu0 %v1215_v0  ;;  %s1488_s15 = sshll.u32 %s356_s13, 4  ;;  %s1106_s17 = scalar_lea.vmem %s1483_s30, 128  ;;  %s753_s15 = int_to_ptr.vmem [resolvable:$true] %s1488_s15 }
  0x71   : > { %929 = vmatpush3.msra.mxu0 %v380_v8  ;;  %v364_v12 = vadd.f32 1e-30, %v363_v11  ;;  %v458_v25 = vstv %s379_s8  ;;  %p1107_p3 = scmp.ne.s32.totalorder %s1483_s30, %s1106_s17  ;;  %p1580_p12 = scmp.ne.s32.totalorder %s1574_s23, 0 }
  0x72   : > { %931 = vmatmul.mubr.msk.f32.vlgmr.msra.gmra.mxu0 %vm368_vm1, %v357_v3  ;;  %s1223_s20 = smov [#allocation9]  }
  0x73   : > { %1014 = vrsqrt.f32 %v364_v12  ;;  %p1108_p10 = pnand %p1107_p3, %p1580_p12  ;;  %s1110_s8 = sshll.u32 %s1223_s20, 4  ;;  %s1111_s8 = int_to_ptr.vmem [resolvable:$false] %s1110_s8 }
  0x74   : > { %s1112_s22 = scalar_lea.vmem %s1111_s8, 256  ;;  %p1113_p13 = scmp.lt.s32.totalorder %s1483_s30, %s1111_s8 }
  0x75   : > { %p1109_p2 = pneg %p1108_p10  ;;  %p1114_p0 = scmp.lt.s32.totalorder %s1112_s22, %s1106_s17 }
  0x77   : > { %p1115_p5 = por %p1114_p0, %p1113_p13 }
  0x79   : > { %p1116_p9 = pnand %p1115_p5, %p1109_p2 }
  0x80   : > { %v1015_v13 = vpop.eup %1014 }
  0x81   : > { %v1431_v14 = vmul.f32 %v1015_v13, %v359_v6  ;;  %v1433_v15 = vmul.f32 %v1015_v13, %v360_v7 }
  0x83   : > { %v369_v16 = vsel %vm368_vm1, %v1431_v14, 0.0  ;;  %v372_v17 = vsel %vm368_vm1, %v1433_v15, 0.0 }
  0x84   : > { %370 = vadd.xlane.f32.xlu0 %v369_v16 }
  0x88   : > { %373 = vadd.xlane.f32.xlu0 %v372_v17 }
 0x10d   : > { %v371_v18 = vpop.xlane.xlu0 %370 }
 0x10e   : > { %v375_v20 = vmul.f32 %v371_v18, %v371_v18 }
 0x111   : > { %v374_v19 = vpop.xlane.xlu0 %373 }
 0x112   : > { %v376_v21 = vmul.f32 %v374_v19, %v374_v19 }
 0x114   : > { %v377_v22 = vadd.f32 %v376_v21, %v375_v20 }
 0x116   : > { %v378_v23 = vmul.f32 0.0009765625, %v377_v22 }
 0x118   : > { %v457_v24 = vsub.f32 1.0, %v378_v23 }
 0x11a   : > { %v459_v26 = vmul.f32 %v458_v25, %v457_v24 }
 0x132   : > { %v453_v27 = vpop.f32.mrf.mxu0 }
 0x133   : > { %v1439_v28 = vmul.f32 %v459_v26, %v453_v27 }
 0x134   : > { %v932_v29 = vpop.f32.mrf.mxu0 }
 0x135   : > { %v464_v30 = vand.u32 2139095040, %v1439_v28  ;;  %v461_v34 = vand.u32 2147483647, %v1439_v28  ;;  %vm463_vm9 = vcmp.lt.s32.totalorder %v1439_v28, 0 }
 0x137   : > { %v465_v31 = vshrl.u32 %v464_v30, 23  ;;  %v468_v37 = vand.u32 8388607, %v461_v34  ;;  %vm462_vm10 = vcmp.le.f32.partialorder %v461_v34, 0.7853982 }
 0x139   : > { %v901_v32 = vadd.s32 4294967169, %v465_v31  ;;  %v469_v56 = vor.u32 8388608, %v468_v37 }
 0x13b   : > { %v471_v33 = vadd.s32 1, %v901_v32  ;;  %v509_v6 = vshll.u32 %v469_v56, 8 }
 0x13d   : > { %vm472_vm2 = vcmp.gt.s32.totalorder %v471_v33, 0 }
 0x13e   : > { %v473_v35 = vsel %vm472_vm2, %v471_v33, 0  ;;  %vm553_vm2 = vweird.f32 %v1439_v28 }
 0x13f   : > { %v475_v36 = vand.u32 31, %v473_v35  ;;  %v474_v39 = vshrl.u32 %v473_v35, 5 }
 0x141   : > { %v476_v38 = vsub.s32 32, %v475_v36  ;;  %v478_v41 = vshll.u32 %v1217_v40, %v475_v36  ;;  %v481_v43 = vshll.u32 %v1218_v42, %v475_v36  ;;  %v484_v47 = vshll.u32 %v1219_v45, %v475_v36 }
 0x142   : > { %v487_v50 = vshll.u32 %v1220_v48, %v475_v36  ;;  %v490_v53 = vshll.u32 %v1221_v51, %v475_v36  ;;  %vm493_vm3 = vcmp.lt.s32.totalorder %v474_v39, 1  ;;  %vm496_vm4 = vcmp.lt.s32.totalorder %v474_v39, 4 }
 0x143   : > { %v479_v44 = vshrl.u32 %v1218_v42, %v476_v38  ;;  %v482_v46 = vshrl.u32 %v1219_v45, %v476_v38  ;;  %v485_v49 = vshrl.u32 %v1220_v48, %v476_v38  ;;  %v488_v52 = vshrl.u32 %v1221_v51, %v476_v38 }
 0x144   : > { %v491_v55 = vshrl.u32 %v1222_v54, %v476_v38  ;;  %v477_v1 = vshrl.u32 %v1217_v40, %v476_v38  ;;  %vm495_vm5 = vcmp.lt.s32.totalorder %v474_v39, 3  ;;  %vm494_vm6 = vcmp.lt.s32.totalorder %v474_v39, 2 }
 0x145   : > { %v480_v57 = vor.u32 %v479_v44, %v478_v41  ;;  %v483_v58 = vor.u32 %v482_v46, %v481_v43  ;;  %v486_v59 = vor.u32 %v485_v49, %v484_v47  ;;  %v489_v60 = vor.u32 %v488_v52, %v487_v50 }
 0x146   : > { %v492_v61 = vor.u32 %v491_v55, %v490_v53 }
 0x147   : > { %v498_v62 = vsel %vm496_vm4, %v486_v59, 2102212464  ;;  %v501_v63 = vsel %vm493_vm3, %v480_v57, %v483_v58  ;;  %v505_v0 = vsel %vm493_vm3, %v483_v58, %v486_v59  ;;  %v502_v2 = vsel %vm496_vm4, %v489_v60, 920167782 }
 0x148   : > { %v506_v3 = vsel %vm496_vm4, %v492_v61, 1326507024  ;;  %v503_v4 = vsel %vm495_vm5, %v486_v59, %v502_v2  ;;  %v497_v7 = vsel %vm493_vm3, %v477_v1, %v480_v57  ;;  %v499_v8 = vsel %vm495_vm5, %v483_v58, %v498_v62 }
 0x149   : > { %v507_v5 = vsel %vm495_vm5, %v489_v60, %v506_v3  ;;  %v504_v9 = vsel %vm494_vm6, %v501_v63, %v503_v4  ;;  %v500_v17 = vsel %vm494_vm6, %v497_v7, %v499_v8 }
 0x14a   : > { %v508_v10 = vsel %vm494_vm6, %v505_v0, %v507_v5  ;;  %v1448_v13 = vmul.u32.u64.low %v509_v6, %v504_v9  ;;  %v1449_v16 = vmul.u32.u64.high %v509_v6, %v504_v9, %v1448_v13  ;;  %v516_v19 = vmul.u32 %v509_v6, %v500_v17 }
 0x14b   : > { %v1445_v11 = vmul.u32.u64.low %v509_v6, %v508_v10  ;;  %v1446_v12 = vmul.u32.u64.high %v509_v6, %v508_v10, %v1445_v11 }
 0x14c   : > { %v519_v18 = vadd.s32 1, %v1449_v16 }
 0x14d   : > { %vm518_vm7 = vc.u32 %v1446_v12, %v1448_v13  ;;  %v517_v32 = vadd.s32 %v1448_v13, %v1446_v12 }
 0x14e   : > { %v520_v20 = vsel %vm518_vm7, %v519_v18, %v1449_v16 }
 0x14f   : > { %v521_v21 = vadd.s32 %v520_v20, %v516_v19 }
 0x151   : > { %v522_v22 = vadd.s32 536870912, %v521_v21 }
 0x153   : > { %v523_v23 = vshrl.u32 %v522_v22, 30 }
 0x155   : > { %v524_v24 = vshll.u32 %v523_v23, 30  ;;  %v547_v46 = vsub.s32 4, %v523_v23 }
 0x157   : > { %v525_v25 = vsub.s32 %v521_v21, %v524_v24  ;;  %v548_v49 = vsel %vm463_vm9, %v547_v46, %v523_v23 }
 0x158   : > { %v550_v50 = vsel %vm462_vm10, 0, %v548_v49 }
 0x159   : > { %v527_v26 = vsub.s32 0, %v525_v25  ;;  %v657_v51 = vadd.s32 3, %v550_v50  ;;  %v554_v52 = vand.u32 3, %v550_v50 }
 0x15b   : > { %v902_v27 = vmin.u32 %v527_v26, %v525_v25  ;;  %v658_v53 = vand.u32 3, %v657_v51  ;;  %vm559_vm11 = vcmp.eq.s32.totalorder %v554_v52, 2  ;;  %vm556_vm13 = vcmp.eq.s32.totalorder %v554_v52, 0 }
 0x15c   : > { %vm555_vm15 = vcmp.lt.s32.totalorder %v554_v52, 2 }
 0x15d   : > { %v529_v29 = vclz %v902_v27  ;;  %vm663_vm12 = vcmp.eq.s32.totalorder %v658_v53, 2  ;;  %vm660_vm14 = vcmp.eq.s32.totalorder %v658_v53, 0  ;;  %vm659_vm0 = vcmp.lt.s32.totalorder %v658_v53, 2  ;;  %v910_v27 = vld [vmem:[%s1557_s5] ss:$0 sm:$0xff] }
 0x15f   : > { %v903_v30 = vadd.s32 4294967294, %v529_v29 }
 0x161   : > { %vm904_vm8 = vcmp.lt.s32.totalorder %v903_v30, 0 }
 0x162   : > { %v532_v31 = vsel %vm904_vm8, 0, %v903_v30 }
 0x163   : > { %v533_v33 = vsub.s32 32, %v532_v31  ;;  %v537_v35 = vsub.s32 4294967266, %v532_v31  ;;  %v534_v36 = vshll.u32 %v525_v25, %v532_v31  ;;  %v909_v25 = vld [vmem:[%s1556_s4] ss:$0 sm:$0xff] }
 0x165   : > { %v535_v37 = vshrl.u32 %v517_v32, %v533_v33  ;;  %v538_v38 = vadd.s32 127, %v537_v35 }
 0x167   : > { %v536_v39 = vor.u32 %v535_v37, %v534_v36  ;;  %v539_v40 = vshll.u32 %v538_v38, 23 }
 0x169   : > { %v540_v41 = vor.u32 4788187, %v539_v40  ;;  %v543_v43 = vcvt.s32.f32 %v536_v39 }
 0x16b   : > { %v541_v42 = vand.u32 2147483647, %v540_v41 }
 0x16d   : > { %v544_v44 = vmul.f32 %v543_v43, %v541_v42 }
 0x16f   : > { %v545_v45 = vxor.u32 2147483648, %v544_v44 }
 0x171   : > { %v546_v47 = vsel %vm463_vm9, %v545_v45, %v544_v44 }
 0x172   : > { %v549_v48 = vsel %vm462_vm10, %v1439_v28, %v546_v47 }
 0x173   : > { %1016 = vcosq.f32 %v549_v48 }
 0x174   : > { %1018 = vsinq.f32 %v549_v48 }
 0x180   : > { %v1017_v54 = vpop.eup %1016 }
 0x181   : > { %v1019_v55 = vpop.eup %1018  ;;  %v560_v56 = vxor.u32 2147483648, %v1017_v54 }
 0x182   : > { %v557_v57 = vxor.u32 2147483648, %v1019_v55 }
 0x183   : > { %v561_v58 = vsel %vm559_vm11, %v560_v56, %v1019_v55  ;;  %v665_v34 = vsel %vm663_vm12, %v560_v56, %v1019_v55 }
 0x184   : > { %v558_v59 = vsel %vm556_vm13, %v1017_v54, %v557_v57  ;;  %v662_v60 = vsel %vm660_vm14, %v1017_v54, %v557_v57 }
 0x185   : > { %v562_v61 = vsel %vm555_vm15, %v558_v59, %v561_v58  ;;  %v666_v62 = vsel %vm659_vm0, %v662_v60, %v665_v34 }
 0x186   : > { %v563_v63 = vsel %vm553_vm2, nan, %v562_v61  ;;  %v667_v0 = vsel %vm553_vm2, nan, %v666_v62 }
 0x187   : > { %v668_v1 = vmul.f32 %v563_v63, %v1431_v14  ;;  %v669_v2 = vmul.f32 %v667_v0, %v1433_v15  ;;  %v671_v3 = vmul.f32 %v667_v0, %v1431_v14  ;;  %v672_v4 = vmul.f32 %v563_v63, %v1433_v15 }
 0x189   : > { %v670_v5 = vsub.f32 %v668_v1, %v669_v2  ;;  %v673_v7 = vadd.f32 %v672_v4, %v671_v3 }
 0x18b   : > { %v676_v6 = vsel %vm368_vm1, %v670_v5, 0.0  ;;  %v704_v8 = vsel %vm368_vm1, %v673_v7, 0.0 }
 0x18c   : > { %677 = vadd.xlane.f32.xlu1 %v676_v6 }
 0x190   : > { %705 = vadd.xlane.f32.xlu1 %v704_v8 }
 0x215   : > { %v678_v28 = vpop.xlane.xlu1 %677 }
 0x216   : > { %v679_v9 = vmul.f32 0.03125, %v678_v28 }
 0x218   : > { %v680_v10 = vsub.f32 %v670_v5, %v679_v9 }
 0x219   : > { %v706_v11 = vpop.xlane.xlu1 %705 }
 0x21a   : > { %v707_v12 = vmul.f32 0.03125, %v706_v11  ;;  %v681_v13 = vmul.f32 %v680_v10, %v680_v10 }
 0x21c   : > { %v708_v16 = vsub.f32 %v673_v7, %v707_v12  ;;  %v682_v17 = vsel %vm368_vm1, %v681_v13, 0.0 }
 0x21d   : > { %683 = vadd.xlane.f32.xlu0 %v682_v17 }
 0x21e   : > { %v709_v14 = vmul.f32 %v708_v16, %v708_v16 }
 0x220   : > { %v710_v15 = vsel %vm368_vm1, %v709_v14, 0.0 }
 0x221   : > { %711 = vadd.xlane.f32.xlu1 %v710_v15 }
 0x2a6   : > { %v684_v18 = vpop.xlane.xlu0 %683 }
 0x2a7   : > { %v685_v19 = vmul.f32 0.03125, %v684_v18 }
 0x2a9   : > { %v686_v20 = vadd.f32 1e-08, %v685_v19 }
 0x2aa   : > { %v712_v21 = vpop.xlane.xlu1 %711 }
 0x2ab   : > { %1020 = vrsqrt.f32 %v686_v20  ;;  %v713_v22 = vmul.f32 0.03125, %v712_v21 }
 0x2ad   : > { %v714_v23 = vadd.f32 1e-08, %v713_v22 }
 0x2af   : > { %1022 = vrsqrt.f32 %v714_v23 }
 0x2b8   : > { %v1021_v24 = vpop.eup %1020 }
 0x2b9   : > { %v688_v26 = vmul.f32 %v1021_v24, %v680_v10 }
 0x2bb   : > { %v695_v29 = vmul.f32 %v909_v25, %v688_v26 }
 0x2bc   : > { %v1023_v30 = vpop.eup %1022 }
 0x2bd   : > { %v716_v31 = vmul.f32 %v1023_v30, %v708_v16  ;;  %v702_v32 = vadd.f32 %v910_v27, %v695_v29 }
 0x2bf   : > { %703 = vst.msk [vmem:[%s349_s19] sm:$0xff] %vm368_vm1, %v702_v32  ;;  %v717_v33 = vmul.f32 %v909_v25, %v716_v31 }
 0x2c0   : > { %1119 = shalt.err (!%p1116_p9)
}
 0x2c1   : > { %s1120_s11 = scalar_lea.hbm %s1481_s21, 128  ;;  %s1124_s19 = scalar_lea.hbm %s1558_s6, 256 }
 0x2c2   : > { %p1121_p1 = scmp.ne.s32.totalorder %s1481_s21, %s1120_s11  ;;  %p1125_p7 = scmp.lt.s32.totalorder %s1481_s21, %s1558_s6 }
 0x2c3   : > { %p1126_p11 = scmp.lt.s32.totalorder %s1124_s19, %s1120_s11 }
 0x2c4   : > { %p1122_p4 = pnand %p1121_p1, %p1580_p12 }
 0x2c5   : > { %p1127_p8 = por %p1126_p11, %p1125_p7 }
 0x2c6   : > { %p1123_p6 = pneg %p1122_p4 }
 0x2c8   : > { %p1128_p3 = pnand %p1127_p8, %p1123_p6 }
 0x2ca   : > { %1131 = shalt.err (!%p1128_p3)
}
 0x2cb   : > { %945 = dma.vmem_to_hbm [thread:$0]  (%p1580_p12), %s1483_s30, 128, %s1481_s21, %s721_s10   ;;  %v718_v35 = vadd.f32 %v910_v27, %v717_v33 }
 0x2cc   : > { %s750_s8 = scalar_lea.hbm %s1559_s7, %s913_s18  ;;  %s726_s22 = scalar_lea.sflag [#allocation11], %s1409_s3 }
 0x2cd   : > { %719 = vst.msk [vmem:[%s356_s13] sm:$0xff] %vm368_vm1, %v718_v35  ;;  %s1132_s11 = scalar_lea.vmem %s753_s15, 128  ;;  %s1224_s24 = smov [#allocation10]  }
 0x2ce   : > { %p1133_p10 = scmp.ne.s32.totalorder %s753_s15, %s1132_s11  ;;  %s1136_s25 = sshll.u32 %s1224_s24, 4  ;;  %s1137_s25 = int_to_ptr.vmem [resolvable:$false] %s1136_s25 }
 0x2cf   : > { %s1138_s30 = scalar_lea.vmem %s1137_s25, 256  ;;  %p1139_p0 = scmp.lt.s32.totalorder %s753_s15, %s1137_s25 }
 0x2d0   : > { %p1134_p2 = pnand %p1133_p10, %p1580_p12  ;;  %p1140_p5 = scmp.lt.s32.totalorder %s1138_s30, %s1132_s11 }
 0x2d2   : > { %p1135_p13 = pneg %p1134_p2  ;;  %p1141_p9 = por %p1140_p5, %p1139_p0 }
 0x2d4   : > { %p1142_p1 = pnand %p1141_p9, %p1135_p13 }
 0x2d6   : > { %1145 = shalt.err (!%p1142_p1)
}
 0x2d7   : > { %s1146_s0 = scalar_lea.hbm %s750_s8, 128  ;;  %s1150_s18 = scalar_lea.hbm %s1559_s7, 256 }
 0x2d8   : > { %p1147_p4 = scmp.ne.s32.totalorder %s750_s8, %s1146_s0  ;;  %p1151_p11 = scmp.lt.s32.totalorder %s750_s8, %s1559_s7 }
 0x2d9   : > { %p1152_p8 = scmp.lt.s32.totalorder %s1150_s18, %s1146_s0 }
 0x2da   : > { %p1148_p6 = pnand %p1147_p4, %p1580_p12 }
 0x2db   : > { %p1153_p3 = por %p1152_p8, %p1151_p11 }
 0x2dc   : > { %p1149_p7 = pneg %p1148_p6 }
 0x2de   : > { %p1154_p10 = pnand %p1153_p3, %p1149_p7 }
 0x2e0   : > { %1157 = shalt.err (!%p1154_p10)
}
 0x2e1   : > { %946 = dma.vmem_to_hbm [thread:$0]  (%p1580_p12), %s753_s15, 128, %s750_s8, %s726_s22  }
 0x2e2 PF: > { %s764_s10 = sand.u32 1, %s1196_s26   ;;  %p1581_p2 = scmp.ne.s32.totalorder %s1568_s9, 0 }
 0x2e3   : > { %p1582_p13 = scmp.ge.s32.totalorder %s1208_s29, 2  ;;  %s765_s19 = scalar_lea.sflag [#allocation5], %s764_s10 }
 0x2e5   : > { %p961_p0 = pnand %p1582_p13, %p1581_p2 }
 0x2e7   : > { %p962_p5 = pneg %p961_p0 }
 0x2e9   : > { %1187 = dma.done.wait (%p962_p5), %s765_s19, 128  }
 0x2ea   : > { %1189 = vsyncadd (%p962_p5), %s765_s19, 4294967168  ;;  %s774_s12 = scalar_lea.sflag [#allocation11], %s764_s10 }
 0x2eb   : > { %1191 = dma.done.wait (%p962_p5), %s774_s12, 128  }
 0x2ec   : > { %1193 = vsyncadd (%p962_p5), %s774_s12, 4294967168  ;;  %s1583_s16 = sld [smem:[#allocation17_spill]]  ;;  %p28_p12 = scmp.ge.s32.totalorder %s1322_s14, 4  }
 0x2ed   : > { %s1584_s28 = sld [smem:[#allocation18_spill]]  ;;  %s1585_s26 = smov %s1200_s27 }
 0x2ee   : > { %s1587_s29 = smov %s1322_s14  ;;  %30 = sbr.rel (!%p28_p12) target bundleno = 12 (0xc), region = 123 }
 0x2f2   : > { %s1586_s27 = smov %s1583_s16 }
 0x2f3   :  { %779 = vsyncpa [#allocation4], 1 }
 0x2f4   :  { %781 = vsyncpa [#allocation4 + $0x1], 1 }
 0x2f5   :  { %782 = vsyncpa [#allocation7], 1 }
 0x2f6   :  { %784 = vsyncpa [#allocation7 + $0x1], 1 }
 0x2f7   :  { %785 = vsyncpa [#allocation5], 1 }
 0x2f8   :  { %787 = vsyncpa [#allocation5 + $0x1], 1 }
 0x2f9   :  { %788 = vsyncpa [#allocation11], 1 }
 0x2fa   :  { %790 = vsyncpa [#allocation11 + $0x1], 1 }

</bundles_post_ra>
